<compile_context>
chip_gen: v6e
topology: v6e:2x2x1
jax: 0.10.0
libtpu: 0.0.40
codegen_flags: <defaults>
</compile_context>

<pallas_src>
import functools

import jax
import jax.numpy as jnp
from jax.experimental import pallas as pl
from jax.experimental.pallas import tpu as pltpu

LANE = 128


def _round_up(x, m):
    return ((x + m - 1) // m) * m


# ---------------------------------------------------------------------------
# Pallas kernel bodies (single fused call)
# ---------------------------------------------------------------------------
def _layer_stack(a_ref, h, w_ref, b_ref, num_layers, c_pad):
    """L x (GraphConv + ReLU) with A and activations resident in VMEM.

    a_ref: [Np, Np] bf16 VMEM ref   (dense adjacency, A[dst, src]) -- loaded per layer
    h:     [Np, Cp] bf16            (node features, channel-padded)
    w_ref: [L, Cp, 2*Cp] bf16       (cols [0:Cp] = W_root, cols [Cp:2Cp] = W_rel)
    b_ref: [L, 1, Cp] f32
    """
    for li in range(num_layers):
        # project-then-aggregate (associativity-equivalent to PyG GraphConv)
        proj = jnp.dot(h, w_ref[li], preferred_element_type=jnp.float32)       # [Np, 2Cp] f32
        root = proj[:, :c_pad]                                                 # f32
        rel = proj[:, c_pad:].astype(jnp.bfloat16)                             # bf16 MXU operand
        agg = jnp.dot(a_ref[...], rel, preferred_element_type=jnp.float32)     # [Np, Cp] f32
        out = root + agg + b_ref[li]                                           # f32 epilogue
        h = jnp.maximum(out, 0.0).astype(jnp.bfloat16)                         # ReLU; dropout = id (eval)
    return h


def _masked_log_softmax(z, c_out):
    """Numerically-stable log_softmax over the last dim, ignoring padded lanes >= c_out."""
    lane = jax.lax.broadcasted_iota(jnp.int32, z.shape, dimension=z.ndim - 1)
    zm = jnp.where(lane < c_out, z, jnp.float32(-1e30))
    m = jnp.max(zm, axis=-1, keepdims=True)
    s = zm - m
    lse = jnp.log(jnp.sum(jnp.exp(s), axis=-1, keepdims=True))
    return s - lse


def _kgnn_pool_kernel(a_ref, x_ref, w_ref, b_ref, p_ref, inv_ref, o_ref, *,
                      num_layers, c_pad, c_out):
    """Fused: L x (GraphConv + ReLU) -> global_mean_pool -> log_softmax."""
    h = _layer_stack(a_ref, x_ref[...], w_ref, b_ref, num_layers, c_pad)
    # global_mean_pool: exact bf16 one-hot matmul (single MXU pass) + f32 1/|V_g| row scale
    pooled = jnp.dot(p_ref[...], h, preferred_element_type=jnp.float32) * inv_ref[...]
    o_ref[...] = _masked_log_softmax(pooled, c_out)


def _kgnn_node_kernel(a_ref, x_ref, w_ref, b_ref, o_ref, *, num_layers, c_pad, c_out):
    """Fused: L x (GraphConv + ReLU) -> per-node log_softmax (no pooling matmul)."""
    h = _layer_stack(a_ref, x_ref[...], w_ref, b_ref, num_layers, c_pad)
    o_ref[...] = _masked_log_softmax(h.astype(jnp.float32), c_out)


def _full_spec(shape):
    # single-block BlockSpec covering the whole (already padded, lane-dense) array
    return pl.BlockSpec(shape, lambda: tuple(0 for _ in shape))


# ---------------------------------------------------------------------------
# VMEM budget / cost estimate
# ---------------------------------------------------------------------------
def _vmem_cap_bytes():
    try:
        return int(pltpu.get_tpu_info().vmem_capacity_bytes)
    except Exception:
        return 64 << 20  # conservative (v7x per-TC)


def _vmem_limit_bytes(n_pad, c_pad, num_layers, g_pad):
    a = 2 * n_pad * n_pad
    x = 2 * n_pad * c_pad
    w = 2 * num_layers * c_pad * 2 * c_pad
    b = 4 * num_layers * c_pad
    p = 2 * g_pad * n_pad
    inv = 4 * g_pad
    out = 4 * max(g_pad, n_pad) * c_pad
    # per-layer temporaries: proj f32 [Np,2Cp] + rel bf16 [Np,Cp] + agg f32 [Np,Cp] + h bf16 [Np,Cp]
    tmp = n_pad * c_pad * (8 + 2 + 4 + 2)
    est = int((2 * (a + x + w + b + p + inv + out) + tmp) * 1.2)  # dbl-buffered IO + 20% headroom
    cap = int(_vmem_cap_bytes() * 0.9)
    return max(min(est, cap), min(16 << 20, cap))


def _cost_estimate(n_pad, c_pad, num_layers, g_pad, graph_classification):
    flops = num_layers * (2 * n_pad * c_pad * (2 * c_pad) + 2 * n_pad * n_pad * c_pad)
    rows = g_pad if graph_classification else n_pad
    bytes_accessed = (2 * n_pad * n_pad + 2 * n_pad * c_pad
                      + 2 * num_layers * c_pad * 2 * c_pad + 4 * num_layers * c_pad
                      + 4 * rows * c_pad)
    if graph_classification:
        flops += 2 * g_pad * n_pad * c_pad
        bytes_accessed += 2 * g_pad * n_pad + 4 * g_pad
    return pl.CostEstimate(flops=flops, transcendentals=rows * c_pad,
                           bytes_accessed=bytes_accessed)


# ---------------------------------------------------------------------------
# Parameter init / packing
# ---------------------------------------------------------------------------
def init_kgnn_params(key, in_channels, out_channels, hidden_units, number_layers):
    """GraphConv layer params: lin_rel (weight + bias) and lin_root (weight, no bias).

    Stored pre-transposed as [c_in, c_out] so the kernel right-multiplies on the MXU.
    """
    dims = [in_channels] + [hidden_units] * (number_layers - 1) + [out_channels]
    params = []
    for li in range(number_layers):
        c_in, c_out = dims[li], dims[li + 1]
        key, k1, k2 = jax.random.split(key, 3)
        scale = 1.0 / jnp.sqrt(jnp.float32(c_in))
        w_rel = jax.random.normal(k1, (c_in, c_out), jnp.float32) * scale
        w_root = jax.random.normal(k2, (c_in, c_out), jnp.float32) * scale
        b_rel = jnp.zeros((1, c_out), jnp.float32)
        params.append((w_rel, w_root, b_rel))
    return params


def _pack_params(params, c_pad):
    """Per layer: [Cp, 2Cp] bf16 (cols [0:Cp]=W_root, cols [Cp:2Cp]=W_rel); bias [1, Cp] f32."""
    w_list, b_list = [], []
    for (w_rel, w_root, b_rel) in params:
        c_in, c_out = w_rel.shape
        w = jnp.zeros((c_pad, 2 * c_pad), jnp.float32)
        w = w.at[:c_in, :c_out].set(w_root)                        # root projection lanes
        w = w.at[:c_in, c_pad:c_pad + c_out].set(w_rel)            # rel projection lanes
        b = jnp.zeros((1, c_pad), jnp.float32).at[:, :c_out].set(b_rel)
        w_list.append(w.astype(jnp.bfloat16))
        b_list.append(b)
    return jnp.stack(w_list, axis=0), jnp.stack(b_list, axis=0)


# ---------------------------------------------------------------------------
# Forward wrapper (dense adjacency / pooling one-hot / padding built in JAX)
# ---------------------------------------------------------------------------
@functools.partial(jax.jit, static_argnames=("num_graphs", "graph_classification"))
def kgnn_forward(x, edge_index, edge_attr, batch, params,
                 num_graphs, graph_classification=True):
    n, c_in = x.shape
    num_layers = len(params)
    c_out = params[-1][0].shape[1]
    c_dims = [c_in] + [p[0].shape[1] for p in params]
    c_pad = _round_up(max(c_dims), LANE)
    n_pad = _round_up(n, LANE)
    g_pad = _round_up(max(num_graphs, 1), 8)

    # A[dst, src] = sum of edge weights; scatter-add in f32 (exact for duplicate edges),
    # cast to bf16 fused into the scatter output by XLA. Zero-padded to [Np, Np].
    a = jnp.zeros((n_pad, n_pad), jnp.float32)
    a = a.at[edge_index[1], edge_index[0]].add(edge_attr.astype(jnp.float32))
    a = a.astype(jnp.bfloat16)

    # node features, zero-padded to [Np, Cp], bf16
    x_pad = jnp.zeros((n_pad, c_pad), jnp.bfloat16).at[:n, :c_in].set(x.astype(jnp.bfloat16))

    w_stack, b_stack = _pack_params(params, c_pad)

    compiler_params = pltpu.CompilerParams(
        vmem_limit_bytes=_vmem_limit_bytes(n_pad, c_pad, num_layers, g_pad))

    if graph_classification:
        # P[g, i] = 1 if node i belongs to graph g (exact 0/1 one-hot, bf16 MXU operand);
        # the mean is recovered with an f32 [Gp, 1] 1/|V_g| scale in the kernel epilogue.
        onehot = (batch[None, :] == jnp.arange(g_pad)[:, None]).astype(jnp.float32)  # [Gp, N]
        counts = jnp.maximum(jnp.sum(onehot, axis=1, keepdims=True), 1.0)            # [Gp, 1]
        p = jnp.zeros((g_pad, n_pad), jnp.bfloat16).at[:, :n].set(onehot.astype(jnp.bfloat16))
        inv_counts = (1.0 / counts).astype(jnp.float32)

        out = pl.pallas_call(
            functools.partial(_kgnn_pool_kernel, num_layers=num_layers,
                              c_pad=c_pad, c_out=c_out),
            out_shape=jax.ShapeDtypeStruct((g_pad, c_pad), jnp.float32),
            in_specs=[
                _full_spec(a.shape),
                _full_spec(x_pad.shape),
                _full_spec(w_stack.shape),
                _full_spec(b_stack.shape),
                _full_spec(p.shape),
                _full_spec(inv_counts.shape),
            ],
            out_specs=_full_spec((g_pad, c_pad)),
            compiler_params=compiler_params,
            cost_estimate=_cost_estimate(n_pad, c_pad, num_layers, g_pad, True),
        )(a, x_pad, w_stack, b_stack, p, inv_counts)
        return out[:num_graphs, :c_out]

    # node-classification path: log_softmax directly on node features (no pooling matmul)
    out = pl.pallas_call(
        functools.partial(_kgnn_node_kernel, num_layers=num_layers,
                          c_pad=c_pad, c_out=c_out),
        out_shape=jax.ShapeDtypeStruct((n_pad, c_pad), jnp.float32),
        in_specs=[
            _full_spec(a.shape),
            _full_spec(x_pad.shape),
            _full_spec(w_stack.shape),
            _full_spec(b_stack.shape),
        ],
        out_specs=_full_spec((n_pad, c_pad)),
        compiler_params=compiler_params,
        cost_estimate=_cost_estimate(n_pad, c_pad, num_layers, g_pad, False),
    )(a, x_pad, w_stack, b_stack)
    return out[:n, :c_out]


# ---------------------------------------------------------------------------
# Example run
# ---------------------------------------------------------------------------
if __name__ == "__main__":
    key = jax.random.PRNGKey(0)

    # small synthetic graph batch
    num_nodes = 16
    num_edges = 40
    in_channels = 8
    hidden_units = 32
    out_channels = 8
    number_layers = 3
    num_graphs = 2

    key, kx, ks, kd, kw, kp = jax.random.split(key, 6)
    x = jax.random.normal(kx, (num_nodes, in_channels), jnp.float32)
    src = jax.random.randint(ks, (num_edges,), 0, num_nodes)
    dst = jax.random.randint(kd, (num_edges,), 0, num_nodes)
    edge_index = jnp.stack([src, dst], axis=0)          # [2, E]
    edge_attr = jax.random.uniform(kw, (num_edges,), jnp.float32)
    batch = jnp.concatenate(
        [jnp.zeros((num_nodes // 2,), jnp.int32),
         jnp.ones((num_nodes - num_nodes // 2,), jnp.int32)]
    )

    params = init_kgnn_params(kp, in_channels, out_channels,
                              hidden_units, number_layers)

    # graph-classification path
    out_g = kgnn_forward(x, edge_index, edge_attr, batch, params,
                         num_graphs=num_graphs, graph_classification=True)
    out_g = jax.block_until_ready(out_g)
    assert out_g.shape == (num_graphs, out_channels)
    assert bool(jnp.all(jnp.isfinite(out_g)))
    assert bool(jnp.allclose(jnp.sum(jnp.exp(out_g), axis=-1), 1.0, atol=1e-4))

    # node-classification path
    out_n = kgnn_forward(x, edge_index, edge_attr, batch, params,
                         num_graphs=num_graphs, graph_classification=False)
    out_n = jax.block_until_ready(out_n)
    assert out_n.shape == (num_nodes, out_channels)
    assert bool(jnp.all(jnp.isfinite(out_n)))
    assert bool(jnp.allclose(jnp.sum(jnp.exp(out_n), axis=-1), 1.0, atol=1e-4))

    print("KERNEL_OK")
</pallas_src>

<mosaic_0001>
module attributes {stable_mosaic.version = 11 : i64} {
  func.func private @main(%arg0: i32) attributes {dimension_semantics = [#tpu.dimension_semantics<core_parallel>], iteration_bounds = array<i64: 2>, tpu.core_type = #tpu.core_type<sc_scalar_subcore>, window_params = []} {
    return
  }
}

module attributes {stable_mosaic.version = 11 : i64} {
  func.func private @main(%arg0: i32) attributes {dimension_semantics = [#tpu.dimension_semantics<core_parallel>], iteration_bounds = array<i64: 2>, tpu.core_type = #tpu.core_type<sc_scalar_subcore>, window_params = []} {
    return
  }
}

module attributes {stable_mosaic.version = 11 : i64} {
  func.func @_kgnn_pool_kernel(%arg0: memref<128x128xbf16, #tpu.memory_space<vmem>>, %arg1: memref<128x128xbf16, #tpu.memory_space<vmem>>, %arg2: memref<3x128x256xbf16, #tpu.memory_space<vmem>>, %arg3: memref<3x1x128xf32, #tpu.memory_space<vmem>>, %arg4: memref<8x128xbf16, #tpu.memory_space<vmem>>, %arg5: memref<8x1xf32, #tpu.memory_space<vmem>>, %arg6: memref<8x128xf32, #tpu.memory_space<vmem>>) attributes {dimension_semantics = [], scalar_prefetch = 0 : i64, scratch_operands = 0 : i64, tpu.core_type = #tpu.core_type<tc>} {
    %c0 = arith.constant 0 : index
    %c0_0 = arith.constant 0 : index
    %0 = vector.load %arg1[%c0, %c0_0] : memref<128x128xbf16, #tpu.memory_space<vmem>>, vector<128x128xbf16>
    %c0_1 = arith.constant 0 : index
    %c0_2 = arith.constant 0 : index
    %c0_3 = arith.constant 0 : index
    %1 = vector.load %arg2[%c0_1, %c0_2, %c0_3] : memref<3x128x256xbf16, #tpu.memory_space<vmem>>, vector<1x128x256xbf16>
    %2 = vector.shape_cast %1 : vector<1x128x256xbf16> to vector<128x256xbf16>
    %cst = arith.constant dense<0.000000e+00> : vector<128x256xf32>
    %3 = tpu.matmul %0, %2, %cst {dimension_numbers = #tpu.dot_dimension_numbers<[1], [0], [0], [1], [0, 0, 1, 1], [], []>} : vector<128x128xbf16>, vector<128x256xbf16>, vector<128x256xf32> -> vector<128x256xf32>
    %4 = vector.extract_strided_slice %3 {offsets = [0, 0], sizes = [128, 128], strides = [1, 1]} : vector<128x256xf32> to vector<128x128xf32>
    %5 = vector.extract_strided_slice %3 {offsets = [0, 128], sizes = [128, 128], strides = [1, 1]} : vector<128x256xf32> to vector<128x128xf32>
    %6 = arith.truncf %5 : vector<128x128xf32> to vector<128x128xbf16>
    %c0_4 = arith.constant 0 : index
    %c0_5 = arith.constant 0 : index
    %7 = vector.load %arg0[%c0_4, %c0_5] : memref<128x128xbf16, #tpu.memory_space<vmem>>, vector<128x128xbf16>
    %cst_6 = arith.constant dense<0.000000e+00> : vector<128x128xf32>
    %8 = tpu.matmul %7, %6, %cst_6 {dimension_numbers = #tpu.dot_dimension_numbers<[1], [0], [0], [1], [0, 0, 1, 1], [], []>} : vector<128x128xbf16>, vector<128x128xbf16>, vector<128x128xf32> -> vector<128x128xf32>
    %9 = arith.addf %4, %8 : vector<128x128xf32>
    %c0_7 = arith.constant 0 : index
    %c0_8 = arith.constant 0 : index
    %c0_9 = arith.constant 0 : index
    %10 = vector.load %arg3[%c0_7, %c0_8, %c0_9] : memref<3x1x128xf32, #tpu.memory_space<vmem>>, vector<1x1x128xf32>
    %11 = vector.shape_cast %10 : vector<1x1x128xf32> to vector<1x128xf32>
    %12 = vector.broadcast %11 : vector<1x128xf32> to vector<128x128xf32>
    %13 = arith.addf %9, %12 : vector<128x128xf32>
    %cst_10 = arith.constant 0.000000e+00 : f32
    %14 = vector.broadcast %cst_10 : f32 to vector<128x128xf32>
    %15 = arith.maximumf %13, %14 : vector<128x128xf32>
    %16 = arith.truncf %15 : vector<128x128xf32> to vector<128x128xbf16>
    %c1 = arith.constant 1 : index
    %c0_11 = arith.constant 0 : index
    %c0_12 = arith.constant 0 : index
    %17 = vector.load %arg2[%c1, %c0_11, %c0_12] : memref<3x128x256xbf16, #tpu.memory_space<vmem>>, vector<1x128x256xbf16>
    %18 = vector.shape_cast %17 : vector<1x128x256xbf16> to vector<128x256xbf16>
    %cst_13 = arith.constant dense<0.000000e+00> : vector<128x256xf32>
    %19 = tpu.matmul %16, %18, %cst_13 {dimension_numbers = #tpu.dot_dimension_numbers<[1], [0], [0], [1], [0, 0, 1, 1], [], []>} : vector<128x128xbf16>, vector<128x256xbf16>, vector<128x256xf32> -> vector<128x256xf32>
    %20 = vector.extract_strided_slice %19 {offsets = [0, 0], sizes = [128, 128], strides = [1, 1]} : vector<128x256xf32> to vector<128x128xf32>
    %21 = vector.extract_strided_slice %19 {offsets = [0, 128], sizes = [128, 128], strides = [1, 1]} : vector<128x256xf32> to vector<128x128xf32>
    %22 = arith.truncf %21 : vector<128x128xf32> to vector<128x128xbf16>
    %c0_14 = arith.constant 0 : index
    %c0_15 = arith.constant 0 : index
    %23 = vector.load %arg0[%c0_14, %c0_15] : memref<128x128xbf16, #tpu.memory_space<vmem>>, vector<128x128xbf16>
    %cst_16 = arith.constant dense<0.000000e+00> : vector<128x128xf32>
    %24 = tpu.matmul %23, %22, %cst_16 {dimension_numbers = #tpu.dot_dimension_numbers<[1], [0], [0], [1], [0, 0, 1, 1], [], []>} : vector<128x128xbf16>, vector<128x128xbf16>, vector<128x128xf32> -> vector<128x128xf32>
    %25 = arith.addf %20, %24 : vector<128x128xf32>
    %c1_17 = arith.constant 1 : index
    %c0_18 = arith.constant 0 : index
    %c0_19 = arith.constant 0 : index
    %26 = vector.load %arg3[%c1_17, %c0_18, %c0_19] : memref<3x1x128xf32, #tpu.memory_space<vmem>>, vector<1x1x128xf32>
    %27 = vector.shape_cast %26 : vector<1x1x128xf32> to vector<1x128xf32>
    %28 = vector.broadcast %27 : vector<1x128xf32> to vector<128x128xf32>
    %29 = arith.addf %25, %28 : vector<128x128xf32>
    %cst_20 = arith.constant 0.000000e+00 : f32
    %30 = vector.broadcast %cst_20 : f32 to vector<128x128xf32>
    %31 = arith.maximumf %29, %30 : vector<128x128xf32>
    %32 = arith.truncf %31 : vector<128x128xf32> to vector<128x128xbf16>
    %c2 = arith.constant 2 : index
    %c0_21 = arith.constant 0 : index
    %c0_22 = arith.constant 0 : index
    %33 = vector.load %arg2[%c2, %c0_21, %c0_22] : memref<3x128x256xbf16, #tpu.memory_space<vmem>>, vector<1x128x256xbf16>
    %34 = vector.shape_cast %33 : vector<1x128x256xbf16> to vector<128x256xbf16>
    %cst_23 = arith.constant dense<0.000000e+00> : vector<128x256xf32>
    %35 = tpu.matmul %32, %34, %cst_23 {dimension_numbers = #tpu.dot_dimension_numbers<[1], [0], [0], [1], [0, 0, 1, 1], [], []>} : vector<128x128xbf16>, vector<128x256xbf16>, vector<128x256xf32> -> vector<128x256xf32>
    %36 = vector.extract_strided_slice %35 {offsets = [0, 0], sizes = [128, 128], strides = [1, 1]} : vector<128x256xf32> to vector<128x128xf32>
    %37 = vector.extract_strided_slice %35 {offsets = [0, 128], sizes = [128, 128], strides = [1, 1]} : vector<128x256xf32> to vector<128x128xf32>
    %38 = arith.truncf %37 : vector<128x128xf32> to vector<128x128xbf16>
    %c0_24 = arith.constant 0 : index
    %c0_25 = arith.constant 0 : index
    %39 = vector.load %arg0[%c0_24, %c0_25] : memref<128x128xbf16, #tpu.memory_space<vmem>>, vector<128x128xbf16>
    %cst_26 = arith.constant dense<0.000000e+00> : vector<128x128xf32>
    %40 = tpu.matmul %39, %38, %cst_26 {dimension_numbers = #tpu.dot_dimension_numbers<[1], [0], [0], [1], [0, 0, 1, 1], [], []>} : vector<128x128xbf16>, vector<128x128xbf16>, vector<128x128xf32> -> vector<128x128xf32>
    %41 = arith.addf %36, %40 : vector<128x128xf32>
    %c2_27 = arith.constant 2 : index
    %c0_28 = arith.constant 0 : index
    %c0_29 = arith.constant 0 : index
    %42 = vector.load %arg3[%c2_27, %c0_28, %c0_29] : memref<3x1x128xf32, #tpu.memory_space<vmem>>, vector<1x1x128xf32>
    %43 = vector.shape_cast %42 : vector<1x1x128xf32> to vector<1x128xf32>
    %44 = vector.broadcast %43 : vector<1x128xf32> to vector<128x128xf32>
    %45 = arith.addf %41, %44 : vector<128x128xf32>
    %cst_30 = arith.constant 0.000000e+00 : f32
    %46 = vector.broadcast %cst_30 : f32 to vector<128x128xf32>
    %47 = arith.maximumf %45, %46 : vector<128x128xf32>
    %48 = arith.truncf %47 : vector<128x128xf32> to vector<128x128xbf16>
    %c0_31 = arith.constant 0 : index
    %c0_32 = arith.constant 0 : index
    %49 = vector.load %arg4[%c0_31, %c0_32] : memref<8x128xbf16, #tpu.memory_space<vmem>>, vector<8x128xbf16>
    %cst_33 = arith.constant dense<0.000000e+00> : vector<8x128xf32>
    %50 = tpu.matmul %49, %48, %cst_33 {dimension_numbers = #tpu.dot_dimension_numbers<[1], [0], [0], [1], [0, 0, 1, 1], [], []>} : vector<8x128xbf16>, vector<128x128xbf16>, vector<8x128xf32> -> vector<8x128xf32>
    %c0_34 = arith.constant 0 : index
    %c0_35 = arith.constant 0 : index
    %51 = vector.load %arg5[%c0_34, %c0_35] : memref<8x1xf32, #tpu.memory_space<vmem>>, vector<8x1xf32>
    %52 = vector.broadcast %51 : vector<8x1xf32> to vector<8x128xf32>
    %53 = arith.mulf %50, %52 : vector<8x128xf32>
    %54 = tpu.iota {dimensions = array<i32: 1>} : vector<8x128xi32>
    %c8_i32 = arith.constant 8 : i32
    %55 = vector.broadcast %c8_i32 : i32 to vector<8x128xi32>
    %56 = arith.cmpi slt, %54, %55 : vector<8x128xi32>
    %cst_36 = arith.constant -1.000000e+30 : f32
    %57 = vector.broadcast %cst_36 : f32 to vector<8x128xf32>
    %58 = arith.select %56, %53, %57 : vector<8x128xi1>, vector<8x128xf32>
    %cst_37 = arith.constant dense<0xFF800000> : vector<8xf32>
    %59 = vector.multi_reduction <maximumf>, %58, %cst_37 [1] : vector<8x128xf32> to vector<8xf32>
    %60 = vector.shape_cast %59 : vector<8xf32> to vector<8x1xf32>
    %61 = vector.broadcast %60 : vector<8x1xf32> to vector<8x128xf32>
    %62 = arith.subf %58, %61 : vector<8x128xf32>
    %63 = math.exp %62 : vector<8x128xf32>
    %cst_38 = arith.constant dense<0.000000e+00> : vector<8xf32>
    %64 = vector.multi_reduction <add>, %63, %cst_38 [1] : vector<8x128xf32> to vector<8xf32>
    %65 = vector.shape_cast %64 : vector<8xf32> to vector<8x1xf32>
    %66 = math.log %65 : vector<8x1xf32>
    %67 = vector.broadcast %66 : vector<8x1xf32> to vector<8x128xf32>
    %68 = arith.subf %62, %67 : vector<8x128xf32>
    %c0_39 = arith.constant 0 : index
    %c0_40 = arith.constant 0 : index
    %69 = vector.load %arg6[%c0_39, %c0_40] : memref<8x128xf32, #tpu.memory_space<vmem>>, vector<8x128xf32>
    tpu.vector_store %arg6[%c0_39, %c0_40], %68 {strides = array<i32>} : memref<8x128xf32, #tpu.memory_space<vmem>>, vector<8x128xf32>,
    return
  }
}

</mosaic_0001>

<bundles_post_ra>
// kernel: kgnn_forward.1
= control target key start
LH: loop header
LB: loop body
LE: loop exit
PB: predicated region body
PF: predicated region fallthrough
CT: control target
= control target key end

     0   :  { %v1724_v1 = vmov 0   ;;  %vm1726_vm0 = vmmov 0   ;;  %s2241_s2 = inlined_call_operand.vmem [shape: bf16[3,128,256], index: 2, kind: input, shape index: {}]   ;;  %s2242_s1 = inlined_call_operand.vmem [shape: bf16[128,128], index: 1, kind: input, shape index: {}]   ;;  %s2243_s0 = inlined_call_operand.vmem [shape: bf16[128,128], index: 0, kind: input, shape index: {}]   ;;  %s2244_s3 = inlined_call_operand.vmem [shape: f32[3,1,128], index: 3, kind: input, shape index: {}]   ;;  %s2245_s5 = inlined_call_operand.vmem [shape: f32[8,1], index: 5, kind: input, shape index: {}]   ;;  %s2246_s4 = inlined_call_operand.vmem [shape: bf16[8,128], index: 4, kind: input, shape index: {}]   ;;  %s2247_s6 = inlined_call_operand.vmem [shape: f32[8,128], index: 6, kind: output, shape index: {}]  }
   0x1   :  { %v1632_v0 = vld [vmem:[%s2241_s2 + $0x74] ss:$8 sps:$4 sm:$0xff]   ;;  %216 = vmatprep.mubr.bf16.mxu0 %v1724_v1  ;;  %1631 = vset.pattern.permute.xlu0 %v1724_v1  ;;  %v1634_v2 = vld [vmem:[%s2241_s2 + $0x70] ss:$8 sps:$4 sm:$0xff]   ;;  %v1635_v3 = vld [vmem:[%s2241_s2 + $0x64] ss:$8 sps:$4 sm:$0xff]  }
   0x2   :  { %184 = vmatprep.subr.bf16.mxu0 %v1632_v0  ;;  %v1637_v4 = vld [vmem:[%s2241_s2 + $0x60] ss:$8 sps:$4 sm:$0xff]   ;;  %v1638_v5 = vld [vmem:[%s2241_s2 + $0x54] ss:$8 sps:$4 sm:$0xff]   ;;  %v1640_v6 = vld [vmem:[%s2241_s2 + $0x50] ss:$8 sps:$4 sm:$0xff]  }
   0x3   :  { %185 = vmatpush1.bf16.msra.mxu0 %v1634_v2  ;;  %v1641_v7 = vld [vmem:[%s2241_s2 + $0x44] ss:$8 sps:$4 sm:$0xff]   ;;  %v1643_v8 = vld [vmem:[%s2241_s2 + $0x40] ss:$8 sps:$4 sm:$0xff]   ;;  %v1644_v9 = vld [vmem:[%s2241_s2 + $0x34] ss:$8 sps:$4 sm:$0xff]  }
   0x4   :  { %186 = vmatprep.subr.bf16.mxu0 %v1635_v3  ;;  %v1646_v10 = vld [vmem:[%s2241_s2 + $0x30] ss:$8 sps:$4 sm:$0xff]   ;;  %v1647_v11 = vld [vmem:[%s2241_s2 + $0x24] ss:$8 sps:$4 sm:$0xff]   ;;  %v1649_v12 = vld [vmem:[%s2241_s2 + $0x20] ss:$8 sps:$4 sm:$0xff]  }
   0x5   :  { %v1650_v13 = vld [vmem:[%s2241_s2 + $0x14] ss:$8 sps:$4 sm:$0xff]   ;;  %v1652_v14 = vld [vmem:[%s2241_s2 + $0x10] ss:$8 sps:$4 sm:$0xff]   ;;  %v1653_v15 = vld [vmem:[%s2241_s2 + $0x4] ss:$8 sps:$4 sm:$0xff]  }
   0x6   :  { %v1655_v16 = vld [vmem:[%s2241_s2] ss:$8 sps:$4 sm:$0xff]   ;;  %v1658_v19 = vld [vmem:[%s2242_s1 + $0x10] sm:$0xff]   ;;  %v1659_v20 = vld [vmem:[%s2242_s1 + $0x18] sm:$0xff]  }
   0x7   :  { %187 = vmatpush1.bf16.msra.mxu0 %v1637_v4  ;;  %v1656_v17 = vld [vmem:[%s2242_s1] sm:$0xff]   ;;  %v1657_v18 = vld [vmem:[%s2242_s1 + $0x8] sm:$0xff]   ;;  %v1662_v23 = vld [vmem:[%s2242_s1 + $0x30] sm:$0xff]  }
   0x8   :  { %188 = vmatprep.subr.bf16.mxu0 %v1638_v5  ;;  %v1660_v21 = vld [vmem:[%s2242_s1 + $0x20] sm:$0xff]   ;;  %v1661_v22 = vld [vmem:[%s2242_s1 + $0x28] sm:$0xff]   ;;  %v1663_v24 = vld [vmem:[%s2242_s1 + $0x38] sm:$0xff]  }
   0x9   :  { %v1846_v25 = vld [vmem:[%s2243_s0] sm:$0xff]   ;;  %v1674_v3 = vld [vmem:[%s2241_s2 + $0xf4] ss:$8 sps:$4 sm:$0xff]   ;;  %v1888_v4 = vld [vmem:[%s2243_s0 + $0x8] sm:$0xff]  }
   0xa   :  { %1528 = vmatprep.mubr.bf16.mxu1 %v1846_v25  ;;  %v1893_v5 = vld [vmem:[%s2243_s0 + $0x10] sm:$0xff]  }
   0xb   :  { %189 = vmatpush1.bf16.msra.mxu0 %v1640_v6  ;;  %v1672_v6 = vld [vmem:[%s2241_s2 + $0xf0] ss:$8 sps:$4 sm:$0xff]  }
   0xc   :  { %190 = vmatprep.subr.bf16.mxu0 %v1641_v7  ;;  %v1677_v7 = vld [vmem:[%s2241_s2 + $0xe4] ss:$8 sps:$4 sm:$0xff]  }
   0xf   :  { %191 = vmatpush1.bf16.msra.mxu0 %v1643_v8  ;;  %v1675_v8 = vld [vmem:[%s2241_s2 + $0xe0] ss:$8 sps:$4 sm:$0xff]  }
  0x10   :  { %192 = vmatprep.subr.bf16.mxu0 %v1644_v9  ;;  %v1680_v9 = vld [vmem:[%s2241_s2 + $0xd4] ss:$8 sps:$4 sm:$0xff]  }
  0x13   :  { %193 = vmatpush1.bf16.msra.mxu0 %v1646_v10  ;;  %v1912_v10 = vld [vmem:[%s2243_s0 + $0x18] sm:$0xff]  }
  0x14   :  { %194 = vmatprep.subr.bf16.mxu0 %v1647_v11  ;;  %v1917_v11 = vld [vmem:[%s2243_s0 + $0x20] sm:$0xff]  }
  0x17   :  { %195 = vmatpush1.bf16.msra.mxu0 %v1649_v12  ;;  %v1678_v12 = vld [vmem:[%s2241_s2 + $0xd0] ss:$8 sps:$4 sm:$0xff]  }
  0x18   :  { %196 = vmatprep.subr.bf16.mxu0 %v1650_v13  ;;  %v1683_v13 = vld [vmem:[%s2241_s2 + $0xc4] ss:$8 sps:$4 sm:$0xff]  }
  0x1b   :  { %197 = vmatpush1.bf16.msra.mxu0 %v1652_v14  ;;  %v1681_v14 = vld [vmem:[%s2241_s2 + $0xc0] ss:$8 sps:$4 sm:$0xff]  }
  0x1c   :  { %198 = vmatprep.subr.bf16.mxu0 %v1653_v15  ;;  %v1686_v15 = vld [vmem:[%s2241_s2 + $0xb4] ss:$8 sps:$4 sm:$0xff]  }
  0x1f   :  { %199 = vmatpush1.bf16.msra.mxu0 %v1655_v16  ;;  %v1936_v16 = vld [vmem:[%s2243_s0 + $0x28] sm:$0xff]  }
  0x22   :  { %217 = vmatmul.mubr.bf16.vlgmr.msra.gmra.mxu0 %v1656_v17  ;;  %v1941_v17 = vld [vmem:[%s2243_s0 + $0x30] sm:$0xff]  }
  0x23   :  { %226 = vmatprep.mubr.bf16.mxu0 %v1724_v1 }
  0x2a   :  { %227 = vmatmul.mubr.bf16.gmra.mxu0 %v1657_v18  ;;  %v1684_v18 = vld [vmem:[%s2241_s2 + $0xb0] ss:$8 sps:$4 sm:$0xff]  }
  0x2b   :  { %236 = vmatprep.mubr.bf16.mxu0 %v1724_v1 }
  0x32   :  { %237 = vmatmul.mubr.bf16.gmra.mxu0 %v1658_v19  ;;  %v1951_v19 = vld [vmem:[%s2243_s0 + $0x38] sm:$0xff]  }
  0x33   :  { %246 = vmatprep.mubr.bf16.mxu0 %v1724_v1 }
  0x3a   :  { %247 = vmatmul.mubr.bf16.gmra.mxu0 %v1659_v20  ;;  %v1689_v20 = vld [vmem:[%s2241_s2 + $0xa4] ss:$8 sps:$4 sm:$0xff]  }
  0x3b   :  { %256 = vmatprep.mubr.bf16.mxu0 %v1724_v1 }
  0x42   :  { %257 = vmatmul.mubr.bf16.gmra.mxu0 %v1660_v21  ;;  %v1687_v21 = vld [vmem:[%s2241_s2 + $0xa0] ss:$8 sps:$4 sm:$0xff]  }
  0x43   :  { %266 = vmatprep.mubr.bf16.mxu0 %v1724_v1 }
  0x4a   :  { %267 = vmatmul.mubr.bf16.gmra.mxu0 %v1661_v22  ;;  %v1692_v22 = vld [vmem:[%s2241_s2 + $0x94] ss:$8 sps:$4 sm:$0xff]  }
  0x4b   :  { %276 = vmatprep.mubr.bf16.mxu0 %v1724_v1 }
  0x52   :  { %277 = vmatmul.mubr.bf16.gmra.mxu0 %v1662_v23  ;;  %v1690_v23 = vld [vmem:[%s2241_s2 + $0x90] ss:$8 sps:$4 sm:$0xff]  }
  0x53   :  { %286 = vmatprep.mubr.bf16.mxu0 %v1724_v1 }
  0x5a   :  { %287 = vmatmul.mubr.bf16.gmra.mxu0 %v1663_v24  ;;  %v1695_v24 = vld [vmem:[%s2241_s2 + $0x84] ss:$8 sps:$4 sm:$0xff]  }
  0x5b   :  { %1560 = vmatprep.mubr.bf16.mxu0 %v1846_v25 }
  0xe2   :  { %v1850_v26 = vpop.f32.mrf.mxu0 }
  0xe4   :  { %v220_v27 = vpop.f32.mrf.mxu0 }
  0xe6   :  { %v1852_v28 = vpop.f32.mrf.mxu0 }
  0xe8   :  { %v224_v29 = vpop.f32.mrf.mxu0 }
  0xe9   :  { %v297_v30 = vpack.c.bf16 %v224_v29, %v220_v27  ;;  %v1693_v27 = vld [vmem:[%s2241_s2 + $0x80] ss:$8 sps:$4 sm:$0xff]  }
  0xea   :  { %v1854_v31 = vpop.f32.mrf.mxu0 }
  0xec   :  { %v230_v32 = vpop.f32.mrf.mxu0 }
  0xee   :  { %v1856_v33 = vpop.f32.mrf.mxu0 }
  0xf0   :  { %v234_v34 = vpop.f32.mrf.mxu0 }
  0xf1   :  { %v298_v35 = vpack.c.bf16 %v234_v34, %v230_v32 }
  0xf2   :  { %v1858_v36 = vpop.f32.mrf.mxu0 }
  0xf4   :  { %v240_v37 = vpop.f32.mrf.mxu0 }
  0xf6   :  { %v1860_v38 = vpop.f32.mrf.mxu0 }
  0xf8   :  { %v244_v39 = vpop.f32.mrf.mxu0 }
  0xf9   :  { %v299_v2 = vpack.c.bf16 %v244_v39, %v240_v37 }
  0xfa   :  { %v1862_v40 = vpop.f32.mrf.mxu0 }
  0xfc   :  { %v250_v41 = vpop.f32.mrf.mxu0 }
  0xfe   :  { %v1864_v42 = vpop.f32.mrf.mxu0 }
 0x100   :  { %v254_v43 = vpop.f32.mrf.mxu0 }
 0x101   :  { %v300_v0 = vpack.c.bf16 %v254_v43, %v250_v41 }
 0x102   :  { %v1866_v44 = vpop.f32.mrf.mxu0 }
 0x104   :  { %v260_v45 = vpop.f32.mrf.mxu0 }
 0x106   :  { %v1868_v46 = vpop.f32.mrf.mxu0 }
 0x108   :  { %v264_v47 = vpop.f32.mrf.mxu0 }
 0x109   :  { %v301_v63 = vpack.c.bf16 %v264_v47, %v260_v45 }
 0x10a   :  { %v1870_v48 = vpop.f32.mrf.mxu0 }
 0x10c   :  { %v270_v49 = vpop.f32.mrf.mxu0 }
 0x10e   :  { %v1872_v50 = vpop.f32.mrf.mxu0 }
 0x110   :  { %v274_v51 = vpop.f32.mrf.mxu0 }
 0x111   :  { %v302_v62 = vpack.c.bf16 %v274_v51, %v270_v49 }
 0x112   :  { %v1874_v52 = vpop.f32.mrf.mxu0 }
 0x114   :  { %v280_v53 = vpop.f32.mrf.mxu0 }
 0x116   :  { %v1876_v54 = vpop.f32.mrf.mxu0 }
 0x118   :  { %v284_v55 = vpop.f32.mrf.mxu0 }
 0x119   :  { %v303_v61 = vpack.c.bf16 %v284_v55, %v280_v53 }
 0x11a   :  { %v1878_v56 = vpop.f32.mrf.mxu0 }
 0x11c   :  { %v290_v57 = vpop.f32.mrf.mxu0 }
 0x11e   :  { %v1880_v58 = vpop.f32.mrf.mxu0 }
 0x120   :  { %v294_v59 = vpop.f32.mrf.mxu0 }
 0x121   :  { %v304_v60 = vpack.c.bf16 %v294_v59, %v290_v57 }
 0x123   :  { %1512 = vmatprep.subr.bf16.mxu1 %v304_v60 }
 0x124   :  { %1513 = vmatpush3.bf16.msra.mxu1 %v304_v60 }
 0x125   :  { %1514 = vmatprep.subr.bf16.mxu1 %v303_v61 }
 0x128   :  { %1515 = vmatpush3.bf16.msra.mxu1 %v303_v61 }
 0x129   :  { %1516 = vmatprep.subr.bf16.mxu1 %v302_v62 }
 0x12c   :  { %1517 = vmatpush3.bf16.msra.mxu1 %v302_v62 }
 0x12d   :  { %1518 = vmatprep.subr.bf16.mxu1 %v301_v63 }
 0x130   :  { %1519 = vmatpush3.bf16.msra.mxu1 %v301_v63 }
 0x131   :  { %1520 = vmatprep.subr.bf16.mxu1 %v300_v0 }
 0x134   :  { %1521 = vmatpush3.bf16.msra.mxu1 %v300_v0 }
 0x135   :  { %1522 = vmatprep.subr.bf16.mxu1 %v299_v2 }
 0x138   :  { %1523 = vmatpush3.bf16.msra.mxu1 %v299_v2 }
 0x139   :  { %1524 = vmatprep.subr.bf16.mxu1 %v298_v35 }
 0x13c   :  { %1525 = vmatpush3.bf16.msra.mxu1 %v298_v35  ;;  %v1977_v35 = vld [vmem:[%s2244_s3] ss:$0 sm:$0xff] }
 0x13d   :  { %1526 = vmatprep.subr.bf16.mxu1 %v297_v30 }
 0x140   :  { %1527 = vmatpush3.bf16.msra.mxu1 %v297_v30 }
 0x141   :  { %626 = vmatprep.subr.bf16.mxu1 %v1674_v3 }
 0x143   :  { %1529 = vmatmul.mubr.bf16.vlgmr.msra.gmra.mxu1 %v1888_v4 }
 0x144   :  { %1532 = vmatprep.mubr.bf16.mxu1 %v1893_v5  ;;  %627 = vmatpush1.bf16.msra.mxu1 %v1672_v6 }
 0x145   :  { %628 = vmatprep.subr.bf16.mxu1 %v1677_v7 }
 0x148   :  { %629 = vmatpush1.bf16.msra.mxu1 %v1675_v8 }
 0x149   :  { %630 = vmatprep.subr.bf16.mxu1 %v1680_v9 }
 0x14b   :  { %1533 = vmatmul.mubr.bf16.gmra.mxu1 %v1912_v10 }
 0x14c   :  { %1536 = vmatprep.mubr.bf16.mxu1 %v1917_v11  ;;  %631 = vmatpush1.bf16.msra.mxu1 %v1678_v12 }
 0x14d   :  { %632 = vmatprep.subr.bf16.mxu1 %v1683_v13 }
 0x150   :  { %633 = vmatpush1.bf16.msra.mxu1 %v1681_v14 }
 0x151   :  { %634 = vmatprep.subr.bf16.mxu1 %v1686_v15 }
 0x153   :  { %1537 = vmatmul.mubr.bf16.gmra.mxu1 %v1936_v16 }
 0x154   :  { %1540 = vmatprep.mubr.bf16.mxu1 %v1941_v17  ;;  %635 = vmatpush1.bf16.msra.mxu1 %v1684_v18 }
 0x155   :  { %636 = vmatprep.subr.bf16.mxu1 %v1689_v20 }
 0x158   :  { %637 = vmatpush1.bf16.msra.mxu1 %v1687_v21 }
 0x159   :  { %638 = vmatprep.subr.bf16.mxu1 %v1692_v22 }
 0x15b   :  { %1541 = vmatmul.mubr.bf16.gmra.mxu1 %v1951_v19 }
 0x15c   :  { %658 = vmatprep.mubr.bf16.mxu1 %v1724_v1  ;;  %639 = vmatpush1.bf16.msra.mxu1 %v1690_v23 }
 0x15d   :  { %640 = vmatprep.subr.bf16.mxu1 %v1695_v24 }
 0x160   :  { %641 = vmatpush1.bf16.msra.mxu1 %v1693_v27 }
 0x203   :  { %v1530_v29 = vpop.f32.mrf.mxu1 }
 0x204   :  { %v468_v51 = vadd.f32 %v1530_v29, %v1854_v31 }
 0x205   :  { %v403_v30 = vpop.f32.mrf.mxu1 }
 0x206   :  { %v466_v32 = vadd.f32 %v403_v30, %v1850_v26  ;;  %v491_v61 = vadd.f32 %v1977_v35, %v468_v51 }
 0x207   :  { %v1531_v34 = vpop.f32.mrf.mxu1 }
 0x208   :  { %v489_v39 = vadd.f32 %v1977_v35, %v466_v32  ;;  %v469_v45 = vadd.f32 %v1531_v34, %v1856_v33  ;;  %v507_v63 = vmax.f32 %v491_v61, 0.0 }
 0x209   :  { %v406_v37 = vpop.f32.mrf.mxu1 }
 0x20a   :  { %v467_v41 = vadd.f32 %v406_v37, %v1852_v28  ;;  %v505_v26 = vmax.f32 %v489_v39, 0.0  ;;  %v492_v57 = vadd.f32 %v1977_v35, %v469_v45 }
 0x20b   :  { %v1534_v43 = vpop.f32.mrf.mxu1 }
 0x20c   :  { %v490_v47 = vadd.f32 %v1977_v35, %v467_v41  ;;  %v508_v28 = vmax.f32 %v492_v57, 0.0  ;;  %v472_v12 = vadd.f32 %v1534_v43, %v1862_v40 }
 0x20d   :  { %v419_v49 = vpop.f32.mrf.mxu1 }
 0x20e   :  { %v506_v53 = vmax.f32 %v490_v47, 0.0  ;;  %v470_v0 = vadd.f32 %v419_v49, %v1858_v36  ;;  %v522_v2 = vpack.c.bf16 %v508_v28, %v507_v63  ;;  %v495_v15 = vadd.f32 %v1977_v35, %v472_v12 }
 0x20f   :  { %v1535_v55 = vpop.f32.mrf.mxu1 }
 0x210   :  { %v521_v59 = vpack.c.bf16 %v506_v53, %v505_v26  ;;  %v493_v6 = vadd.f32 %v1977_v35, %v470_v0  ;;  %v473_v7 = vadd.f32 %v1535_v55, %v1864_v42  ;;  %v511_v22 = vmax.f32 %v495_v15, 0.0 }
 0x211   :  { %v422_v60 = vpop.f32.mrf.mxu1 }
 0x212   :  { %659 = vmatmul.mubr.bf16.vlgmr.msra.gmra.mxu1 %v521_v59  ;;  %v471_v33 = vadd.f32 %v422_v60, %v1860_v38  ;;  %v509_v38 = vmax.f32 %v493_v6, 0.0  ;;  %v496_v13 = vadd.f32 %v1977_v35, %v473_v7 }
 0x213   :  { %668 = vmatprep.mubr.bf16.mxu1 %v1724_v1  ;;  %v1538_v62 = vpop.f32.mrf.mxu1 }
 0x214   :  { %v494_v31 = vadd.f32 %v1977_v35, %v471_v33  ;;  %v512_v18 = vmax.f32 %v496_v13, 0.0  ;;  %v476_v34 = vadd.f32 %v1538_v62, %v1870_v48 }
 0x215   :  { %v435_v3 = vpop.f32.mrf.mxu1 }
 0x216   :  { %v510_v8 = vmax.f32 %v494_v31, 0.0  ;;  %v474_v42 = vadd.f32 %v435_v3, %v1866_v44  ;;  %v524_v40 = vpack.c.bf16 %v512_v18, %v511_v22  ;;  %v499_v41 = vadd.f32 %v1977_v35, %v476_v34 }
 0x217   :  { %v1539_v9 = vpop.f32.mrf.mxu1 }
 0x218   :  { %v523_v14 = vpack.c.bf16 %v510_v8, %v509_v38  ;;  %v497_v27 = vadd.f32 %v1977_v35, %v474_v42  ;;  %v477_v29 = vadd.f32 %v1539_v9, %v1872_v50  ;;  %v515_v47 = vmax.f32 %v499_v41, 0.0 }
 0x219   :  { %v438_v36 = vpop.f32.mrf.mxu1 }
 0x21a   :  { %669 = vmatmul.mubr.bf16.gmra.mxu1 %v522_v2  ;;  %v475_v20 = vadd.f32 %v438_v36, %v1868_v46  ;;  %v513_v46 = vmax.f32 %v497_v27, 0.0  ;;  %v500_v37 = vadd.f32 %v1977_v35, %v477_v29 }
 0x21b   :  { %678 = vmatprep.mubr.bf16.mxu1 %v1724_v1  ;;  %v1542_v21 = vpop.f32.mrf.mxu1 }
 0x21c   :  { %v498_v23 = vadd.f32 %v1977_v35, %v475_v20  ;;  %v516_v43 = vmax.f32 %v500_v37, 0.0  ;;  %v480_v55 = vadd.f32 %v1542_v21, %v1878_v56 }
 0x21d   :  { %v451_v24 = vpop.f32.mrf.mxu1 }
 0x21e   :  { %v514_v30 = vmax.f32 %v498_v23, 0.0  ;;  %v478_v50 = vadd.f32 %v451_v24, %v1874_v52  ;;  %v526_v51 = vpack.c.bf16 %v516_v43, %v515_v47  ;;  %v503_v60 = vadd.f32 %v1977_v35, %v480_v55  ;;  %v1696_v47 = vld [vmem:[%s2241_s2 + $0x170] ss:$8 sps:$4 sm:$0xff]   ;;  %v1710_v55 = vld [vmem:[%s2241_s2 + $0x134] ss:$8 sps:$4 sm:$0xff]  }
 0x21f   :  { %v1543_v32 = vpop.f32.mrf.mxu1 }
 0x220   :  { %v525_v39 = vpack.c.bf16 %v514_v30, %v513_v46  ;;  %v501_v48 = vadd.f32 %v1977_v35, %v478_v50  ;;  %v481_v26 = vadd.f32 %v1543_v32, %v1880_v58  ;;  %v519_v61 = vmax.f32 %v503_v60, 0.0  ;;  %v1701_v50 = vld [vmem:[%s2241_s2 + $0x164] ss:$8 sps:$4 sm:$0xff]   ;;  %v1716_v60 = vld [vmem:[%s2241_s2 + $0x114] ss:$8 sps:$4 sm:$0xff]  }
 0x221   :  { %v454_v44 = vpop.f32.mrf.mxu1 }
 0x222   :  { %679 = vmatmul.mubr.bf16.gmra.mxu1 %v523_v14  ;;  %v479_v45 = vadd.f32 %v454_v44, %v1876_v54  ;;  %v517_v57 = vmax.f32 %v501_v48, 0.0  ;;  %v504_v59 = vadd.f32 %v1977_v35, %v481_v26  ;;  %v1702_v48 = vld [vmem:[%s2241_s2 + $0x150] ss:$8 sps:$4 sm:$0xff]   ;;  %v1707_v26 = vld [vmem:[%s2241_s2 + $0x144] ss:$8 sps:$4 sm:$0xff]  }
 0x223   :  { %688 = vmatprep.mubr.bf16.mxu1 %v1724_v1 }
 0x224   :  { %v502_v49 = vadd.f32 %v1977_v35, %v479_v45  ;;  %v520_v52 = vmax.f32 %v504_v59, 0.0  ;;  %v1698_v45 = vld [vmem:[%s2241_s2 + $0x174] ss:$8 sps:$4 sm:$0xff]   ;;  %v1713_v59 = vld [vmem:[%s2241_s2 + $0x124] ss:$8 sps:$4 sm:$0xff]  }
 0x226   :  { %v518_v53 = vmax.f32 %v502_v49, 0.0  ;;  %v528_v28 = vpack.c.bf16 %v520_v52, %v519_v61  ;;  %v1699_v49 = vld [vmem:[%s2241_s2 + $0x160] ss:$8 sps:$4 sm:$0xff]   ;;  %v1714_v52 = vld [vmem:[%s2241_s2 + $0x110] ss:$8 sps:$4 sm:$0xff]  }
 0x227   :  { %v1719_v61 = vld [vmem:[%s2241_s2 + $0x104] ss:$8 sps:$4 sm:$0xff]  }
 0x228   :  { %v527_v54 = vpack.c.bf16 %v518_v53, %v517_v57  ;;  %v1705_v53 = vld [vmem:[%s2241_s2 + $0x140] ss:$8 sps:$4 sm:$0xff]   ;;  %v1708_v57 = vld [vmem:[%s2241_s2 + $0x130] ss:$8 sps:$4 sm:$0xff]  }
 0x22a   :  { %689 = vmatmul.mubr.bf16.gmra.mxu1 %v524_v40 }
 0x22b   :  { %698 = vmatprep.mubr.bf16.mxu1 %v1724_v1 }
 0x232   :  { %699 = vmatmul.mubr.bf16.gmra.mxu1 %v525_v39 }
 0x233   :  { %708 = vmatprep.mubr.bf16.mxu1 %v1724_v1 }
 0x23a   :  { %709 = vmatmul.mubr.bf16.gmra.mxu1 %v526_v51  ;;  %v1704_v51 = vld [vmem:[%s2241_s2 + $0x154] ss:$8 sps:$4 sm:$0xff]  }
 0x23b   :  { %718 = vmatprep.mubr.bf16.mxu1 %v1724_v1 }
 0x242   :  { %719 = vmatmul.mubr.bf16.gmra.mxu1 %v527_v54  ;;  %v1711_v54 = vld [vmem:[%s2241_s2 + $0x120] ss:$8 sps:$4 sm:$0xff]  }
 0x243   :  { %728 = vmatprep.mubr.bf16.mxu1 %v1724_v1 }
 0x24a   :  { %729 = vmatmul.mubr.bf16.gmra.mxu1 %v528_v28  ;;  %v1717_v28 = vld [vmem:[%s2241_s2 + $0x100] ss:$8 sps:$4 sm:$0xff]  }
 0x24b   :  { %1592 = vmatprep.mubr.bf16.mxu1 %v1846_v25 }
 0x2d2   :  { %v2018_v33 = vpop.f32.mrf.mxu1 }
 0x2d4   :  { %v662_v58 = vpop.f32.mrf.mxu1 }
 0x2d6   :  { %v2020_v62 = vpop.f32.mrf.mxu1 }
 0x2d8   :  { %v666_v56 = vpop.f32.mrf.mxu1 }
 0x2d9   :  { %v739_v63 = vpack.c.bf16 %v666_v56, %v662_v58 }
 0x2da   :  { %v2022_v0 = vpop.f32.mrf.mxu1 }
 0x2dc   :  { %v672_v31 = vpop.f32.mrf.mxu1 }
 0x2de   :  { %v2024_v35 = vpop.f32.mrf.mxu1 }
 0x2e0   :  { %v676_v2 = vpop.f32.mrf.mxu1 }
 0x2e1   :  { %v740_v3 = vpack.c.bf16 %v676_v2, %v672_v31  ;;  %v2110_v2 = vld [vmem:[%s2244_s3 + $0x1] ss:$0 sm:$0xff] }
 0x2e2   :  { %v2026_v6 = vpop.f32.mrf.mxu1 }
 0x2e4   :  { %v682_v7 = vpop.f32.mrf.mxu1 }
 0x2e6   :  { %v2028_v8 = vpop.f32.mrf.mxu1 }
 0x2e8   :  { %v686_v25 = vpop.f32.mrf.mxu1 }
 0x2e9   :  { %v741_v43 = vpack.c.bf16 %v686_v25, %v682_v7 }
 0x2ea   :  { %v2030_v9 = vpop.f32.mrf.mxu1 }
 0x2ec   :  { %v692_v12 = vpop.f32.mrf.mxu1 }
 0x2ee   :  { %v2032_v38 = vpop.f32.mrf.mxu1 }
 0x2f0   :  { %v696_v13 = vpop.f32.mrf.mxu1 }
 0x2f1   :  { %v742_v41 = vpack.c.bf16 %v696_v13, %v692_v12 }
 0x2f2   :  { %v2034_v14 = vpop.f32.mrf.mxu1 }
 0x2f4   :  { %v702_v36 = vpop.f32.mrf.mxu1 }
 0x2f6   :  { %v2036_v15 = vpop.f32.mrf.mxu1 }
 0x2f8   :  { %v706_v18 = vpop.f32.mrf.mxu1 }
 0x2f9   :  { %v743_v44 = vpack.c.bf16 %v706_v18, %v702_v36 }
 0x2fa   :  { %v2038_v20 = vpop.f32.mrf.mxu1 }
 0x2fc   :  { %v712_v21 = vpop.f32.mrf.mxu1 }
 0x2fe   :  { %v2040_v22 = vpop.f32.mrf.mxu1 }
 0x300   :  { %v716_v42 = vpop.f32.mrf.mxu1 }
 0x301   :  { %v744_v39 = vpack.c.bf16 %v716_v42, %v712_v21 }
 0x302   :  { %v2042_v23 = vpop.f32.mrf.mxu1 }
 0x304   :  { %v722_v40 = vpop.f32.mrf.mxu1 }
 0x306   :  { %v2044_v24 = vpop.f32.mrf.mxu1 }
 0x308   :  { %v726_v27 = vpop.f32.mrf.mxu1 }
 0x309   :  { %v745_v37 = vpack.c.bf16 %v726_v27, %v722_v40 }
 0x30a   :  { %v2046_v29 = vpop.f32.mrf.mxu1 }
 0x30c   :  { %v732_v30 = vpop.f32.mrf.mxu1 }
 0x30e   :  { %v2048_v32 = vpop.f32.mrf.mxu1 }
 0x310   :  { %v736_v34 = vpop.f32.mrf.mxu1 }
 0x311   :  { %v746_v46 = vpack.c.bf16 %v736_v34, %v732_v30 }
 0x313   :  { %1544 = vmatprep.subr.bf16.mxu0 %v746_v46 }
 0x314   :  { %1545 = vmatpush3.bf16.msra.mxu0 %v746_v46 }
 0x315   :  { %1546 = vmatprep.subr.bf16.mxu0 %v745_v37 }
 0x318   :  { %1547 = vmatpush3.bf16.msra.mxu0 %v745_v37 }
 0x319   :  { %1548 = vmatprep.subr.bf16.mxu0 %v744_v39 }
 0x31c   :  { %1549 = vmatpush3.bf16.msra.mxu0 %v744_v39 }
 0x31d   :  { %1550 = vmatprep.subr.bf16.mxu0 %v743_v44 }
 0x320   :  { %1551 = vmatpush3.bf16.msra.mxu0 %v743_v44 }
 0x321   :  { %1552 = vmatprep.subr.bf16.mxu0 %v742_v41 }
 0x324   :  { %1553 = vmatpush3.bf16.msra.mxu0 %v742_v41 }
 0x325   :  { %1554 = vmatprep.subr.bf16.mxu0 %v741_v43 }
 0x328   :  { %1555 = vmatpush3.bf16.msra.mxu0 %v741_v43 }
 0x329   :  { %1556 = vmatprep.subr.bf16.mxu0 %v740_v3 }
 0x32c   :  { %1557 = vmatpush3.bf16.msra.mxu0 %v740_v3 }
 0x32d   :  { %1558 = vmatprep.subr.bf16.mxu0 %v739_v63 }
 0x330   :  { %1559 = vmatpush3.bf16.msra.mxu0 %v739_v63 }
 0x331   :  { %1005 = vmatprep.subr.bf16.mxu0 %v1698_v45 }
 0x333   :  { %1561 = vmatmul.mubr.bf16.vlgmr.msra.gmra.mxu0 %v1888_v4 }
 0x334   :  { %1564 = vmatprep.mubr.bf16.mxu0 %v1893_v5  ;;  %1006 = vmatpush1.bf16.msra.mxu0 %v1696_v47 }
 0x335   :  { %1007 = vmatprep.subr.bf16.mxu0 %v1701_v50 }
 0x338   :  { %1008 = vmatpush1.bf16.msra.mxu0 %v1699_v49 }
 0x339   :  { %1009 = vmatprep.subr.bf16.mxu0 %v1704_v51 }
 0x33b   :  { %1565 = vmatmul.mubr.bf16.gmra.mxu0 %v1912_v10 }
 0x33c   :  { %1568 = vmatprep.mubr.bf16.mxu0 %v1917_v11  ;;  %1010 = vmatpush1.bf16.msra.mxu0 %v1702_v48 }
 0x33d   :  { %1011 = vmatprep.subr.bf16.mxu0 %v1707_v26 }
 0x340   :  { %1012 = vmatpush1.bf16.msra.mxu0 %v1705_v53 }
 0x341   :  { %1013 = vmatprep.subr.bf16.mxu0 %v1710_v55 }
 0x343   :  { %1569 = vmatmul.mubr.bf16.gmra.mxu0 %v1936_v16 }
 0x344   :  { %1572 = vmatprep.mubr.bf16.mxu0 %v1941_v17  ;;  %1014 = vmatpush1.bf16.msra.mxu0 %v1708_v57 }
 0x345   :  { %1015 = vmatprep.subr.bf16.mxu0 %v1713_v59 }
 0x348   :  { %1016 = vmatpush1.bf16.msra.mxu0 %v1711_v54 }
 0x349   :  { %1017 = vmatprep.subr.bf16.mxu0 %v1716_v60 }
 0x34b   :  { %1573 = vmatmul.mubr.bf16.gmra.mxu0 %v1951_v19 }
 0x34c   :  { %1037 = vmatprep.mubr.bf16.mxu0 %v1724_v1  ;;  %1018 = vmatpush1.bf16.msra.mxu0 %v1714_v52 }
 0x34d   :  { %1019 = vmatprep.subr.bf16.mxu0 %v1719_v61 }
 0x350   :  { %1020 = vmatpush1.bf16.msra.mxu0 %v1717_v28 }
 0x3f3   :  { %v1562_v58 = vpop.f32.mrf.mxu0 }
 0x3f4   :  { %v846_v21 = vadd.f32 %v1562_v58, %v2022_v0 }
 0x3f5   :  { %v781_v56 = vpop.f32.mrf.mxu0 }
 0x3f6   :  { %v844_v63 = vadd.f32 %v781_v56, %v2018_v33  ;;  %v870_v46 = vadd.f32 %v2110_v2, %v846_v21 }
 0x3f7   :  { %v1563_v31 = vpop.f32.mrf.mxu0 }
 0x3f8   :  { %v868_v7 = vadd.f32 %v2110_v2, %v844_v63  ;;  %v847_v13 = vadd.f32 %v1563_v31, %v2024_v35  ;;  %v886_v39 = vmax.f32 %v870_v46, 0.0 }
 0x3f9   :  { %v784_v3 = vpop.f32.mrf.mxu0 }
 0x3fa   :  { %v845_v25 = vadd.f32 %v784_v3, %v2020_v62  ;;  %v884_v33 = vmax.f32 %v868_v7, 0.0  ;;  %v871_v27 = vadd.f32 %v2110_v2, %v847_v13 }
 0x3fb   :  { %v1566_v12 = vpop.f32.mrf.mxu0 }
 0x3fc   :  { %v869_v36 = vadd.f32 %v2110_v2, %v845_v25  ;;  %v887_v62 = vmax.f32 %v871_v27, 0.0  ;;  %v850_v51 = vadd.f32 %v1566_v12, %v2030_v9 }
 0x3fd   :  { %v797_v18 = vpop.f32.mrf.mxu0 }
 0x3fe   :  { %v885_v42 = vmax.f32 %v869_v36, 0.0  ;;  %v848_v44 = vadd.f32 %v797_v18, %v2026_v6  ;;  %v901_v41 = vpack.c.bf16 %v887_v62, %v886_v39  ;;  %v874_v53 = vadd.f32 %v2110_v2, %v850_v51 }
 0x3ff   :  { %v1567_v40 = vpop.f32.mrf.mxu0 }
 0x400   :  { %v900_v30 = vpack.c.bf16 %v885_v42, %v884_v33  ;;  %v872_v45 = vadd.f32 %v2110_v2, %v848_v44  ;;  %v851_v47 = vadd.f32 %v1567_v40, %v2032_v38  ;;  %v890_v54 = vmax.f32 %v874_v53, 0.0 }
 0x401   :  { %v800_v34 = vpop.f32.mrf.mxu0 }
 0x402   :  { %1038 = vmatmul.mubr.bf16.vlgmr.msra.gmra.mxu0 %v900_v30  ;;  %v849_v35 = vadd.f32 %v800_v34, %v2028_v8  ;;  %v888_v8 = vmax.f32 %v872_v45, 0.0  ;;  %v875_v48 = vadd.f32 %v2110_v2, %v851_v47 }
 0x403   :  { %1047 = vmatprep.mubr.bf16.mxu0 %v1724_v1  ;;  %v1570_v37 = vpop.f32.mrf.mxu0 }
 0x404   :  { %v873_v0 = vadd.f32 %v2110_v2, %v849_v35  ;;  %v891_v55 = vmax.f32 %v875_v48, 0.0  ;;  %v854_v63 = vadd.f32 %v1570_v37, %v2038_v20 }
 0x405   :  { %v813_v43 = vpop.f32.mrf.mxu0 }
 0x406   :  { %v889_v50 = vmax.f32 %v873_v0, 0.0  ;;  %v852_v38 = vadd.f32 %v813_v43, %v2034_v14  ;;  %v903_v9 = vpack.c.bf16 %v891_v55, %v890_v54  ;;  %v878_v7 = vadd.f32 %v2110_v2, %v854_v63 }
 0x407   :  { %v1571_v49 = vpop.f32.mrf.mxu0 }
 0x408   :  { %v902_v26 = vpack.c.bf16 %v889_v50, %v888_v8  ;;  %v876_v61 = vadd.f32 %v2110_v2, %v852_v38  ;;  %v855_v28 = vadd.f32 %v1571_v49, %v2040_v22  ;;  %v894_v13 = vmax.f32 %v878_v7, 0.0 }
 0x409   :  { %v816_v6 = vpop.f32.mrf.mxu0 }
 0x40a   :  { %1048 = vmatmul.mubr.bf16.gmra.mxu0 %v901_v41  ;;  %v853_v57 = vadd.f32 %v816_v6, %v2036_v15  ;;  %v892_v15 = vmax.f32 %v876_v61, 0.0  ;;  %v879_v31 = vadd.f32 %v2110_v2, %v855_v28 }
 0x40b   :  { %1057 = vmatprep.mubr.bf16.mxu0 %v1724_v1  ;;  %v1574_v59 = vpop.f32.mrf.mxu0 }
 0x40c   :  { %v877_v60 = vadd.f32 %v2110_v2, %v853_v57  ;;  %v895_v25 = vmax.f32 %v879_v31, 0.0  ;;  %v858_v42 = vadd.f32 %v1574_v59, %v2046_v29 }
 0x40d   :  { %v829_v52 = vpop.f32.mrf.mxu0 }
 0x40e   :  { %v893_v58 = vmax.f32 %v877_v60, 0.0  ;;  %v856_v22 = vadd.f32 %v829_v52, %v2042_v23  ;;  %v905_v18 = vpack.c.bf16 %v895_v25, %v894_v13  ;;  %v882_v30 = vadd.f32 %v2110_v2, %v858_v42 }
 0x40f   :  { %v1575_v56 = vpop.f32.mrf.mxu0  ;;  %v1725_v25 = vmov 0.0  }
 0x410   :  { %v904_v3 = vpack.c.bf16 %v893_v58, %v892_v15  ;;  %v880_v20 = vadd.f32 %v2110_v2, %v856_v22  ;;  %v859_v21 = vadd.f32 %v1575_v56, %v2048_v32  ;;  %v898_v34 = vmax.f32 %v882_v30, 0.0 }
 0x411   :  { %v832_v14 = vpop.f32.mrf.mxu0 }
 0x412   :  { %1058 = vmatmul.mubr.bf16.gmra.mxu0 %v902_v26  ;;  %v857_v12 = vadd.f32 %v832_v14, %v2044_v24  ;;  %v896_v40 = vmax.f32 %v880_v20, 0.0  ;;  %v883_v27 = vadd.f32 %v2110_v2, %v859_v21 }
 0x413   :  { %1067 = vmatprep.mubr.bf16.mxu0 %v1724_v1 }
 0x414   :  { %v881_v36 = vadd.f32 %v2110_v2, %v857_v12  ;;  %v899_v23 = vmax.f32 %v883_v27, 0.0 }
 0x416   :  { %v897_v33 = vmax.f32 %v881_v36, 0.0  ;;  %v907_v46 = vpack.c.bf16 %v899_v23, %v898_v34 }
 0x418   :  { %v906_v24 = vpack.c.bf16 %v897_v33, %v896_v40  ;;  %v2195_v40 = vld [vmem:[%s2244_s3 + $0x2] ss:$0 sm:$0xff] }
 0x41a   :  { %1068 = vmatmul.mubr.bf16.gmra.mxu0 %v903_v9 }
 0x41b   :  { %1077 = vmatprep.mubr.bf16.mxu0 %v1724_v1 }
 0x422   :  { %1078 = vmatmul.mubr.bf16.gmra.mxu0 %v904_v3 }
 0x423   :  { %1087 = vmatprep.mubr.bf16.mxu0 %v1724_v1 }
 0x42a   :  { %1088 = vmatmul.mubr.bf16.gmra.mxu0 %v905_v18 }
 0x42b   :  { %1097 = vmatprep.mubr.bf16.mxu0 %v1724_v1 }
 0x432   :  { %1098 = vmatmul.mubr.bf16.gmra.mxu0 %v906_v24 }
 0x433   :  { %1107 = vmatprep.mubr.bf16.mxu0 %v1724_v1 }
 0x43a   :  { %1108 = vmatmul.mubr.bf16.gmra.mxu0 %v907_v46 }
 0x4c2   :  { %v2150_v62 = vpop.f32.mrf.mxu0 }
 0x4c4   :  { %v1041_v35 = vpop.f32.mrf.mxu0 }
 0x4c6   :  { %v2152_v32 = vpop.f32.mrf.mxu0 }
 0x4c8   :  { %v1045_v37 = vpop.f32.mrf.mxu0 }
 0x4c9   :  { %v1118_v29 = vpack.c.bf16 %v1045_v37, %v1041_v35 }
 0x4ca   :  { %v2154_v39 = vpop.f32.mrf.mxu0 }
 0x4cc   :  { %v1051_v44 = vpop.f32.mrf.mxu0 }
 0x4ce   :  { %v2156_v0 = vpop.f32.mrf.mxu0 }
 0x4d0   :  { %v1055_v2 = vpop.f32.mrf.mxu0 }
 0x4d1   :  { %v1119_v41 = vpack.c.bf16 %v1055_v2, %v1051_v44 }
 0x4d2   :  { %v2158_v43 = vpop.f32.mrf.mxu0 }
 0x4d4   :  { %v1061_v1 = vpop.f32.mrf.mxu0 }
 0x4d6   :  { %v2160_v45 = vpop.f32.mrf.mxu0 }
 0x4d8   :  { %v1065_v47 = vpop.f32.mrf.mxu0 }
 0x4d9   :  { %v1120_v7 = vpack.c.bf16 %v1065_v47, %v1061_v1 }
 0x4da   :  { %v2162_v50 = vpop.f32.mrf.mxu0 }
 0x4dc   :  { %v1071_v49 = vpop.f32.mrf.mxu0 }
 0x4de   :  { %v2164_v51 = vpop.f32.mrf.mxu0 }
 0x4e0   :  { %v1075_v8 = vpop.f32.mrf.mxu0 }
 0x4e1   :  { %v1121_v14 = vpack.c.bf16 %v1075_v8, %v1071_v49 }
 0x4e2   :  { %v2166_v48 = vpop.f32.mrf.mxu0 }
 0x4e4   :  { %v1081_v26 = vpop.f32.mrf.mxu0 }
 0x4e6   :  { %v2168_v6 = vpop.f32.mrf.mxu0 }
 0x4e8   :  { %v1085_v53 = vpop.f32.mrf.mxu0 }
 0x4e9   :  { %v1122_v3 = vpack.c.bf16 %v1085_v53, %v1081_v26 }
 0x4ea   :  { %v2170_v55 = vpop.f32.mrf.mxu0 }
 0x4ec   :  { %v1091_v57 = vpop.f32.mrf.mxu0 }
 0x4ee   :  { %v2172_v59 = vpop.f32.mrf.mxu0 }
 0x4f0   :  { %v1095_v54 = vpop.f32.mrf.mxu0 }
 0x4f1   :  { %v1123_v31 = vpack.c.bf16 %v1095_v54, %v1091_v57 }
 0x4f2   :  { %v1099_v38 = vpop.f32.mrf.mxu0 }
 0x4f4   :  { %v1101_v60 = vpop.f32.mrf.mxu0 }
 0x4f6   :  { %v2174_v9 = vpop.f32.mrf.mxu0 }
 0x4f8   :  { %v1105_v52 = vpop.f32.mrf.mxu0 }
 0x4f9   :  { %v1124_v15 = vpack.c.bf16 %v1105_v52, %v1101_v60 }
 0x4fa   :  { %v1109_v61 = vpop.f32.mrf.mxu0 }
 0x4fc   :  { %v1111_v28 = vpop.f32.mrf.mxu0 }
 0x4fe   :  { %v1113_v58 = vpop.f32.mrf.mxu0 }
 0x500   :  { %v1115_v56 = vpop.f32.mrf.mxu0 }
 0x501   :  { %v1125_v63 = vpack.c.bf16 %v1115_v56, %v1111_v28 }
 0x503   :  { %1576 = vmatprep.subr.bf16.mxu1 %v1125_v63 }
 0x504   :  { %1577 = vmatpush3.bf16.msra.mxu1 %v1125_v63 }
 0x505   :  { %1578 = vmatprep.subr.bf16.mxu1 %v1124_v15 }
 0x508   :  { %1579 = vmatpush3.bf16.msra.mxu1 %v1124_v15 }
 0x509   :  { %1580 = vmatprep.subr.bf16.mxu1 %v1123_v31 }
 0x50c   :  { %1581 = vmatpush3.bf16.msra.mxu1 %v1123_v31 }
 0x50d   :  { %1582 = vmatprep.subr.bf16.mxu1 %v1122_v3 }
 0x510   :  { %1583 = vmatpush3.bf16.msra.mxu1 %v1122_v3 }
 0x511   :  { %1584 = vmatprep.subr.bf16.mxu1 %v1121_v14 }
 0x514   :  { %1585 = vmatpush3.bf16.msra.mxu1 %v1121_v14 }
 0x515   :  { %1586 = vmatprep.subr.bf16.mxu1 %v1120_v7 }
 0x518   :  { %1587 = vmatpush3.bf16.msra.mxu1 %v1120_v7 }
 0x519   :  { %1588 = vmatprep.subr.bf16.mxu1 %v1119_v41 }
 0x51c   :  { %1589 = vmatpush3.bf16.msra.mxu1 %v1119_v41 }
 0x51d   :  { %1590 = vmatprep.subr.bf16.mxu1 %v1118_v29 }
 0x520   :  { %1591 = vmatpush3.bf16.msra.mxu1 %v1118_v29 }
 0x521   :  { %1608 = vmatprep.subr.bf16.mxu1 %v1725_v25 }
 0x523   :  { %1593 = vmatmul.mubr.bf16.vlgmr.msra.gmra.mxu1 %v1888_v4  ;;  %v1328_v4 = vld [vmem:[%s2245_s5] sm:$0xff] }
 0x524   :  { %1596 = vmatprep.mubr.bf16.mxu1 %v1893_v5  ;;  %1331 = vperm.xlu0 %1631, %v1328_v4  }
 0x52b   :  { %1597 = vmatmul.mubr.bf16.gmra.mxu1 %v1912_v10 }
 0x52c   :  { %1600 = vmatprep.mubr.bf16.mxu1 %v1917_v11 }
 0x533   :  { %1601 = vmatmul.mubr.bf16.gmra.mxu1 %v1936_v16 }
 0x534   :  { %1604 = vmatprep.mubr.bf16.mxu1 %v1941_v17 }
 0x53b   :  { %1605 = vmatmul.mubr.bf16.gmra.mxu1 %v1951_v19 }
 0x53c   :  { %1624 = vmatprep.mubr.msk.bf16.mxu1 %vm1726_vm0, %v1725_v25 }
 0x5e3   :  { %v1594_v5 = vpop.f32.mrf.mxu1 }
 0x5e4   :  { %v1225_v14 = vadd.f32 %v1594_v5, %v2154_v39 }
 0x5e5   :  { %v2188_v10 = vpop.f32.mrf.mxu1 }
 0x5e7   :  { %v1595_v11 = vpop.f32.mrf.mxu1 }
 0x5e9   :  { %v2190_v16 = vpop.f32.mrf.mxu1 }
 0x5ea   :  { %v1224_v4 = vadd.f32 %v2190_v16, %v2152_v32 }
 0x5eb   :  { %v1598_v17 = vpop.f32.mrf.mxu1 }
 0x5ec   :  { %v1248_v5 = vadd.f32 %v2195_v40, %v1224_v4 }
 0x5ed   :  { %v1176_v12 = vpop.f32.mrf.mxu1 }
 0x5ee   :  { %v1227_v56 = vadd.f32 %v1176_v12, %v2158_v43  ;;  %v1264_v16 = vmax.f32 %v1248_v5, 0.0 }
 0x5ef   :  { %v1599_v19 = vpop.f32.mrf.mxu1 }
 0x5f1   :  { %v1179_v13 = vpop.f32.mrf.mxu1 }
 0x5f3   :  { %v1602_v22 = vpop.f32.mrf.mxu1 }
 0x5f4   :  { %v1233_v29 = vadd.f32 %v1602_v22, %v2170_v55  ;;  %v1230_v55 = vadd.f32 %v1599_v19, %v2164_v51 }
 0x5f5   :  { %v1192_v36 = vpop.f32.mrf.mxu1 }
 0x5f6   :  { %v1257_v53 = vadd.f32 %v2195_v40, %v1233_v29  ;;  %v1231_v57 = vadd.f32 %v1192_v36, %v2166_v48  ;;  %v1254_v48 = vadd.f32 %v2195_v40, %v1230_v55 }
 0x5f7   :  { %v1603_v18 = vpop.f32.mrf.mxu1 }
 0x5f8   :  { %v1234_v46 = vadd.f32 %v1603_v18, %v2172_v59  ;;  %v1273_v52 = vmax.f32 %v1257_v53, 0.0  ;;  %v1270_v15 = vmax.f32 %v1254_v48, 0.0 }
 0x5f9   :  { %v1195_v20 = vpop.f32.mrf.mxu1 }
 0x5fa   :  { %v1258_v47 = vadd.f32 %v2195_v40, %v1234_v46  ;;  %v1232_v49 = vadd.f32 %v1195_v20, %v2168_v6  ;;  %v1255_v6 = vadd.f32 %v2195_v40, %v1231_v57  ;;  %v1335_v20 = vlaneseq }
 0x5fb   :  { %v1606_v21 = vpop.f32.mrf.mxu1 }
 0x5fc   :  { %v1237_v33 = vadd.f32 %v1606_v21, %v1109_v61  ;;  %v1274_v54 = vmax.f32 %v1258_v47, 0.0  ;;  %v1228_v61 = vadd.f32 %v1179_v13, %v2160_v45  ;;  %v1271_v63 = vmax.f32 %v1255_v6, 0.0 }
 0x5fd   :  { %v1208_v42 = vpop.f32.mrf.mxu1  ;;  %v1251_v45 = vadd.f32 %v2195_v40, %v1227_v56  ;;  %v1336_v21 = vand.u32 127, %v1335_v20 }
 0x5fe   :  { %v1261_v24 = vadd.f32 %v2195_v40, %v1237_v33  ;;  %v1235_v30 = vadd.f32 %v1208_v42, %v1099_v38  ;;  %v1256_v38 = vadd.f32 %v2195_v40, %v1232_v49  ;;  %v1284_v28 = vpack.c.bf16 %v1274_v54, %v1273_v52  ;;  %v1332_v33 = vpop.permute.xlu0 %1331 }
 0x5ff   :  { %v1607_v27 = vpop.f32.mrf.mxu1  ;;  %v1252_v31 = vadd.f32 %v2195_v40, %v1228_v61  ;;  %v1267_v19 = vmax.f32 %v1251_v45, 0.0  ;;  %vm1337_vm1 = vcmp.lt.s32.totalorder %v1336_v21, 8 }
 0x600   :  { %v1238_v23 = vadd.f32 %v1607_v27, %v1113_v58  ;;  %v1277_v44 = vmax.f32 %v1261_v24, 0.0  ;;  %v1259_v2 = vadd.f32 %v2195_v40, %v1235_v30  ;;  %v1272_v58 = vmax.f32 %v1256_v38, 0.0 }
 0x601   :  { %v1211_v34 = vpop.f32.mrf.mxu1  ;;  %v1268_v12 = vmax.f32 %v1252_v31, 0.0 }
 0x602   :  { %v1262_v35 = vadd.f32 %v2195_v40, %v1238_v23  ;;  %v1236_v37 = vadd.f32 %v1211_v34, %v2174_v9  ;;  %v1275_v59 = vmax.f32 %v1259_v2, 0.0  ;;  %v1229_v9 = vadd.f32 %v1598_v17, %v2162_v50 }
 0x603   :  { %v1226_v50 = vadd.f32 %v1595_v11, %v2156_v0  ;;  %v1283_v3 = vpack.c.bf16 %v1272_v58, %v1271_v63  ;;  %v1249_v0 = vadd.f32 %v2195_v40, %v1225_v14  ;;  %v1223_v11 = vadd.f32 %v2188_v10, %v2150_v62  ;;  %v1287_v10 = vld [vmem:[%s2246_s4] sm:$0xf] }
 0x604   :  { %v1278_v41 = vmax.f32 %v1262_v35, 0.0  ;;  %v1260_v1 = vadd.f32 %v2195_v40, %v1236_v37  ;;  %v1253_v51 = vadd.f32 %v2195_v40, %v1229_v9  ;;  %v1281_v13 = vpack.c.bf16 %v1268_v12, %v1267_v19 }
 0x605   :  { %v1250_v43 = vadd.f32 %v2195_v40, %v1226_v50  ;;  %v1265_v22 = vmax.f32 %v1249_v0, 0.0  ;;  %v1247_v36 = vadd.f32 %v2195_v40, %v1223_v11 }
 0x606   :  { %v1286_v8 = vpack.c.bf16 %v1278_v41, %v1277_v44  ;;  %v1276_v26 = vmax.f32 %v1260_v1, 0.0  ;;  %v1269_v7 = vmax.f32 %v1253_v51, 0.0 }
 0x607   :  { %v1266_v39 = vmax.f32 %v1250_v43, 0.0  ;;  %v1263_v18 = vmax.f32 %v1247_v36, 0.0 }
 0x608   :  { %1609 = vmatpush3.bf16.msra.mxu1 %v1286_v8  ;;  %v1285_v60 = vpack.c.bf16 %v1276_v26, %v1275_v59  ;;  %v1282_v17 = vpack.c.bf16 %v1270_v15, %v1269_v7 }
 0x609   :  { %1610 = vmatprep.subr.bf16.mxu1 %v1725_v25  ;;  %v1280_v32 = vpack.c.bf16 %v1266_v39, %v1265_v22  ;;  %v1279_v62 = vpack.c.bf16 %v1264_v16, %v1263_v18 }
 0x60c   :  { %1611 = vmatpush3.bf16.msra.mxu1 %v1285_v60 }
 0x60d   :  { %1612 = vmatprep.subr.bf16.mxu1 %v1725_v25 }
 0x610   :  { %1613 = vmatpush3.bf16.msra.mxu1 %v1284_v28 }
 0x611   :  { %1614 = vmatprep.subr.bf16.mxu1 %v1725_v25 }
 0x614   :  { %1615 = vmatpush3.bf16.msra.mxu1 %v1283_v3 }
 0x615   :  { %1616 = vmatprep.subr.bf16.mxu1 %v1725_v25 }
 0x618   :  { %1617 = vmatpush3.bf16.msra.mxu1 %v1282_v17 }
 0x619   :  { %1618 = vmatprep.subr.bf16.mxu1 %v1725_v25 }
 0x61c   :  { %1619 = vmatpush3.bf16.msra.mxu1 %v1281_v13 }
 0x61d   :  { %1620 = vmatprep.subr.bf16.mxu1 %v1725_v25 }
 0x620   :  { %1621 = vmatpush3.bf16.msra.mxu1 %v1280_v32 }
 0x621   :  { %1622 = vmatprep.subr.bf16.mxu1 %v1725_v25 }
 0x624   :  { %1623 = vmatpush3.bf16.msra.mxu1 %v1279_v62 }
 0x627   :  { %1625 = vmatmul.mubr.bf16.vlgmr.msra.gmra.mxu1 %v1287_v10 }
 0x6e7   :  { %v1322_v42 = vpop.f32.mrf.mxu1 }
 0x6e8   :  { %v1334_v40 = vmul.f32 %v1332_v33, %v1322_v42 }
 0x6e9   :  { %v1626_v27 = vpop.f32.mrf.mxu1 }
 0x6ea   :  { %v1338_v24 = vsel %vm1337_vm1, %v1334_v40, -1e+30 }
 0x6eb   :  { %1339 = vmax.xlane.f32.xlu0 %v1338_v24  ;;  %v1325_v30 = vpop.f32.mrf.mxu1 }
 0x6ed   :  { %v1627_v23 = vpop.f32.mrf.mxu1 }
 0x774   :  { %v1340_v34 = vpop.xlane.xlu0 %1339 }
 0x775   :  { %v1341_v25 = vsub.f32 %v1338_v24, %v1340_v34 }
 0x777   :  { %v1342_v46 = vmul.f32 1.442695, %v1341_v25 }
 0x779   :  { %1720 = vpow2.f32 %v1342_v46 }
 0x786   :  { %v1721_v35 = vpop.eup %1720 }
 0x787   :  { %1344 = vadd.xlane.f32.xlu1 %v1721_v35 }
 0x810   :  { %v1345_v37 = vpop.xlane.xlu1 %1344 }
 0x811   :  { %1722 = vlog2.f32 %v1345_v37 }
 0x81e   :  { %v1723_v29 = vpop.eup %1722 }
 0x81f   :  { %v1347_v44 = vmul.f32 0.6931472, %v1723_v29 }
 0x821   :  { %v1348_v2 = vsub.f32 %v1341_v25, %v1347_v44 }
 0x823   :  { %1349 = vst [vmem:[%s2247_s6] sm:$0xff] %v1348_v2 }

</bundles_post_ra>
